<compile_context>
chip_gen: v7x
topology: tpu7x:2x2x1
jax: 0.10.0
libtpu: 0.0.40
codegen_flags: <defaults>
</compile_context>

<pallas_src>
import functools

import jax
import jax.numpy as jnp
from jax.experimental import pallas as pl
from jax.experimental.pallas import tpu as pltpu

LANE = 128                       # TPU lane width: pixels are packed 128/lane-row.
TARGET_BLOCK_BYTES = 2 << 20     # ~2 MiB activation block per buffer.


def _round_up(x, m):
    return ((x + m - 1) // m) * m


# ---------------------------------------------------------------------------
# Fused Pallas kernel: composed affine stage + L1/MSE partial sums, one HBM pass.
# ---------------------------------------------------------------------------
def _runner_kernel(p_valid, needs_mask, x_ref, w_ref, b_ref, pred_ref, part_ref):
    # x_ref:    (1, C, R, 128) activations (dense vreg slabs per channel)
    # w_ref:    (C, C)  composed stage weight, SMEM scalars
    # b_ref:    (C,)    composed stage bias,   SMEM scalars
    # pred_ref: (1, C, R, 128) final activations
    # part_ref: (1, 1, 8, 128) per-tile loss partials (lane0 = sum|d|, lane1 = sum d^2)
    x = x_ref[...].astype(jnp.float32)
    n_ch = x.shape[1]

    # Channel slices along a leading (non-tiled) dim -> zero-cost, dense vregs.
    chans = [x[:, c] for c in range(n_ch)]            # each (1, R, 128)

    # Single composed 1x1-conv: out[c] = sum_c' W[c,c'] * x[c'] + b[c]   (VPU path).
    outs = []
    for c in range(n_ch):
        acc = chans[0] * w_ref[c, 0]
        for cp in range(1, n_ch):
            acc = acc + chans[cp] * w_ref[c, cp]
        outs.append(acc + b_ref[c])
    out = jnp.stack(outs, axis=1)                      # (1, C, R, 128)

    pred_ref[...] = out.astype(pred_ref.dtype)

    # Loss epilogue (f32): pixelwise L1 + perceptual-style MSE partial sums.
    diff = out - x

    def _write_loss(d):
        l1 = jnp.sum(jnp.abs(d))
        sq = jnp.sum(d * d)
        lane = jax.lax.broadcasted_iota(jnp.int32, part_ref.shape, 3)
        part_ref[...] = jnp.where(lane == 0, l1, jnp.where(lane == 1, sq, 0.0))

    if needs_mask:
        # Padding exists only in the LAST pixel tile -> gate the mask ops there.
        last = pl.num_programs(1) - 1

        @pl.when(pl.program_id(1) == last)
        def _():
            r = jax.lax.broadcasted_iota(jnp.int32, diff.shape, 2)
            l = jax.lax.broadcasted_iota(jnp.int32, diff.shape, 3)
            pix = (pl.program_id(1) * diff.shape[2] + r) * LANE + l
            _write_loss(jnp.where(pix < p_valid, diff, 0.0))

        @pl.when(pl.program_id(1) != last)
        def _():
            _write_loss(diff)
    else:
        _write_loss(diff)


def fused_pipeline(x_nchw, w_tot, b_tot):
    """Composed network chain + loss partials in a single tiled HBM pass.

    x_nchw: (N, C, H, W), any 32/16-bit float dtype (compute & loss in f32)
    w_tot:  (C, C) composed weight, b_tot: (C,) composed bias
    Returns (pred_nchw, l1_mean, mse_mean).
    """
    N, C, H, W = x_nchw.shape
    P = H * W
    dt = x_nchw.dtype
    itemsize = jnp.dtype(dt).itemsize

    # Row tiling over the pixel axis (rows of 128 pixels).
    rows = pl.cdiv(P, LANE)
    r_cap = max(8, (TARGET_BLOCK_BYTES // (C * LANE * itemsize)) // 8 * 8)
    if rows > r_cap:
        r_tile = r_cap
    elif N == 1 and rows >= 16:
        r_tile = _round_up(pl.cdiv(rows, 2), 8)   # >=2 grid tiles for v7x megacore
    else:
        r_tile = rows                              # full-dim block (any row count)
    num_p = pl.cdiv(rows, r_tile)
    rows_pad = r_tile * num_p
    p_pad = rows_pad * LANE
    needs_mask = (p_pad != P)

    # Free reshapes in the common case (H*W % 128 == 0): no transpose, no pad.
    x3 = x_nchw.reshape(N, C, P)
    if needs_mask:
        x3 = jnp.pad(x3, ((0, 0), (0, 0), (0, p_pad - P)))
    x4 = x3.reshape(N, C, rows_pad, LANE)

    blk_bytes = C * r_tile * LANE * itemsize
    vmem_limit = int(max(16 << 20, min(64 << 20, 4 * blk_bytes + (4 << 20))))

    kern = functools.partial(_runner_kernel, P, needs_mask)
    pred4, partials = pl.pallas_call(
        kern,
        out_shape=(
            jax.ShapeDtypeStruct((N, C, rows_pad, LANE), dt),
            jax.ShapeDtypeStruct((N, num_p, 8, LANE), jnp.float32),
        ),
        grid=(N, num_p),
        in_specs=[
            pl.BlockSpec((1, C, r_tile, LANE), lambda n, p: (n, 0, p, 0)),
            pl.BlockSpec(memory_space=pltpu.MemorySpace.SMEM),   # (C, C) weight
            pl.BlockSpec(memory_space=pltpu.MemorySpace.SMEM),   # (C,)  bias
        ],
        out_specs=(
            pl.BlockSpec((1, C, r_tile, LANE), lambda n, p: (n, 0, p, 0)),
            pl.BlockSpec((1, 1, 8, LANE), lambda n, p: (n, p, 0, 0)),
        ),
        compiler_params=pltpu.CompilerParams(
            dimension_semantics=("parallel", "parallel"),
            vmem_limit_bytes=vmem_limit),
    )(x4, w_tot, b_tot)

    # Prediction back to NCHW (free reshape when no padding was needed).
    if needs_mask:
        pred_nchw = pred4.reshape(N, C, p_pad)[:, :, :P].reshape(N, C, H, W)
    else:
        pred_nchw = pred4.reshape(N, C, H, W)

    total = N * C * H * W
    l1_mean = jnp.sum(partials[:, :, 0, 0]) / total
    mse_mean = jnp.sum(partials[:, :, 0, 1]) / total
    return pred_nchw, l1_mean, mse_mean


# ---------------------------------------------------------------------------
# RunnerWrapper (JAX / Pallas)
# ---------------------------------------------------------------------------
class RunnerWrapper:
    """JAX re-implementation of the runner's forward orchestration."""

    def __init__(self, key, channels=4, training=True):
        self.training = training
        # load_names(args) with the default arg strings:
        self.nets_names_train = [
            'identity_embedder', 'texture_generator', 'keypoints_embedder',
            'inference_generator', 'discriminator']
        self.nets_names_test = [
            'identity_embedder', 'texture_generator', 'keypoints_embedder',
            'inference_generator']
        self.losses_names_train = ['pixelwise', 'perceptual']
        self.losses_names_test = ['pixelwise']
        self.losses_history = {True: {}, False: {}}
        self.metrics_history = {True: {}, False: {}}

        # Deterministic per-network affine stand-ins (near-identity 1x1 convs).
        self.params = {}
        nets_names = sorted(set(self.nets_names_train + self.nets_names_test))
        for name in nets_names:
            key, k1, k2 = jax.random.split(key, 3)
            w = (jnp.eye(channels, dtype=jnp.float32)
                 + 0.1 * jax.random.normal(k1, (channels, channels), jnp.float32))
            b = 0.01 * jax.random.normal(k2, (channels,), jnp.float32)
            self.params[name] = (w, b)

        # Compose each mode's K affine stages ONCE:  y = W_tot @ x + b_tot.
        # TODO(synk): valid only while the stage stand-ins remain affine.
        def compose(names):
            w_tot = jnp.eye(channels, dtype=jnp.float32)
            b_tot = jnp.zeros((channels,), jnp.float32)
            for n in names:
                w, b = self.params[n]
                w_tot = w @ w_tot
                b_tot = w @ b_tot + b
            return w_tot, b_tot

        self._composed = {'train': compose(self.nets_names_train),
                          'test': compose(self.nets_names_test)}

    def forward(self, data_dict):
        mode = 'train' if self.training else 'test'
        losses_names = (self.losses_names_train if self.training
                        else self.losses_names_test)
        w_tot, b_tot = self._composed[mode]

        x = data_dict['target_imgs']                 # NCHW (PyTorch layout)

        # One fused, tiled kernel: composed network stage + both loss partials
        # in a single HBM pass over the activation.
        pred_nchw, l1_mean, mse_mean = fused_pipeline(x, w_tot, b_tot)

        # losses_dict accumulation
        losses_dict = {}
        if 'pixelwise' in losses_names:
            losses_dict['pixelwise'] = l1_mean
        if 'perceptual' in losses_names:
            losses_dict['perceptual'] = mse_mean

        # process_losses_dict: loss = zeros(1); loss += each value  (plain JAX —
        # a dedicated kernel for a 2-element add is pure launch overhead).
        loss = jnp.zeros((1,), jnp.float32)
        for key, value in losses_dict.items():
            self.losses_history[self.training].setdefault(key, []).append(value)
            loss = loss + value

        # TODO(synk): metrics (lpips) require pretrained loss networks; skipped.
        data_dict['pred_target_imgs'] = pred_nchw
        self.data_dict = data_dict
        return loss

    __call__ = forward


# ---------------------------------------------------------------------------
if __name__ == "__main__":
    key = jax.random.PRNGKey(0)
    key, kx = jax.random.split(key)

    N, C, H, W = 2, 4, 16, 16
    target_imgs = jax.random.normal(kx, (N, C, H, W), jnp.float32)  # NCHW
    data_dict = {'target_imgs': target_imgs}

    runner = RunnerWrapper(key, channels=C, training=True)
    loss = runner(data_dict)
    loss = jax.block_until_ready(loss)

    assert loss.shape == (1,)
    assert jnp.isfinite(loss).all()
    assert data_dict['pred_target_imgs'].shape == (N, C, H, W)
    assert bool(jnp.isfinite(data_dict['pred_target_imgs']).all())
    print("KERNEL_OK")
</pallas_src>

<mosaic_0001>
module attributes {stable_mosaic.version = 11 : i64} {
  func.func @_runner_kernel(%arg0: i32, %arg1: i32, %arg2: memref<1x4x2x128xf32, #tpu.memory_space<vmem>>, %arg3: memref<4x4xf32, #tpu.memory_space<smem>>, %arg4: memref<4xf32, #tpu.memory_space<smem>>, %arg5: memref<1x4x2x128xf32, #tpu.memory_space<vmem>>, %arg6: memref<1x1x8x128xf32, #tpu.memory_space<vmem>>) attributes {dimension_semantics = [#tpu.dimension_semantics<parallel>, #tpu.dimension_semantics<parallel>], iteration_bounds = array<i64: 2, 1>, scalar_prefetch = 0 : i64, scratch_operands = 0 : i64, tpu.core_type = #tpu.core_type<tc>, window_params = [{transform_indices = @transform_0, window_bounds = array<i64: 1, 4, 2, 128>}, {transform_indices = @transform_1, window_bounds = array<i64: 4, 4>}, {transform_indices = @transform_2, window_bounds = array<i64: 4>}, {transform_indices = @transform_3, window_bounds = array<i64: 1, 4, 2, 128>}, {transform_indices = @transform_4, window_bounds = array<i64: 1, 1, 8, 128>}]} {
    %c0 = arith.constant 0 : index
    %c0_0 = arith.constant 0 : index
    %c0_1 = arith.constant 0 : index
    %c0_2 = arith.constant 0 : index
    %0 = vector.load %arg2[%c0, %c0_0, %c0_1, %c0_2] : memref<1x4x2x128xf32, #tpu.memory_space<vmem>>, vector<1x4x2x128xf32>
    %1 = vector.extract_strided_slice %0 {offsets = [0, 0, 0, 0], sizes = [1, 1, 2, 128], strides = [1, 1, 1, 1]} : vector<1x4x2x128xf32> to vector<1x1x2x128xf32>
    %2 = vector.shape_cast %1 : vector<1x1x2x128xf32> to vector<1x2x128xf32>
    %3 = vector.extract_strided_slice %0 {offsets = [0, 1, 0, 0], sizes = [1, 1, 2, 128], strides = [1, 1, 1, 1]} : vector<1x4x2x128xf32> to vector<1x1x2x128xf32>
    %4 = vector.shape_cast %3 : vector<1x1x2x128xf32> to vector<1x2x128xf32>
    %5 = vector.extract_strided_slice %0 {offsets = [0, 2, 0, 0], sizes = [1, 1, 2, 128], strides = [1, 1, 1, 1]} : vector<1x4x2x128xf32> to vector<1x1x2x128xf32>
    %6 = vector.shape_cast %5 : vector<1x1x2x128xf32> to vector<1x2x128xf32>
    %7 = vector.extract_strided_slice %0 {offsets = [0, 3, 0, 0], sizes = [1, 1, 2, 128], strides = [1, 1, 1, 1]} : vector<1x4x2x128xf32> to vector<1x1x2x128xf32>
    %8 = vector.shape_cast %7 : vector<1x1x2x128xf32> to vector<1x2x128xf32>
    %c0_3 = arith.constant 0 : index
    %c0_4 = arith.constant 0 : index
    %9 = memref.load %arg3[%c0_3, %c0_4] : memref<4x4xf32, #tpu.memory_space<smem>>
    %10 = vector.broadcast %9 : f32 to vector<1x2x128xf32>
    %11 = arith.mulf %2, %10 : vector<1x2x128xf32>
    %c0_5 = arith.constant 0 : index
    %c1 = arith.constant 1 : index
    %12 = memref.load %arg3[%c0_5, %c1] : memref<4x4xf32, #tpu.memory_space<smem>>
    %13 = vector.broadcast %12 : f32 to vector<1x2x128xf32>
    %14 = arith.mulf %4, %13 : vector<1x2x128xf32>
    %15 = arith.addf %11, %14 : vector<1x2x128xf32>
    %c0_6 = arith.constant 0 : index
    %c2 = arith.constant 2 : index
    %16 = memref.load %arg3[%c0_6, %c2] : memref<4x4xf32, #tpu.memory_space<smem>>
    %17 = vector.broadcast %16 : f32 to vector<1x2x128xf32>
    %18 = arith.mulf %6, %17 : vector<1x2x128xf32>
    %19 = arith.addf %15, %18 : vector<1x2x128xf32>
    %c0_7 = arith.constant 0 : index
    %c3 = arith.constant 3 : index
    %20 = memref.load %arg3[%c0_7, %c3] : memref<4x4xf32, #tpu.memory_space<smem>>
    %21 = vector.broadcast %20 : f32 to vector<1x2x128xf32>
    %22 = arith.mulf %8, %21 : vector<1x2x128xf32>
    %23 = arith.addf %19, %22 : vector<1x2x128xf32>
    %c0_8 = arith.constant 0 : index
    %24 = memref.load %arg4[%c0_8] : memref<4xf32, #tpu.memory_space<smem>>
    %25 = vector.broadcast %24 : f32 to vector<1x2x128xf32>
    %26 = arith.addf %23, %25 : vector<1x2x128xf32>
    %c1_9 = arith.constant 1 : index
    %c0_10 = arith.constant 0 : index
    %27 = memref.load %arg3[%c1_9, %c0_10] : memref<4x4xf32, #tpu.memory_space<smem>>
    %28 = vector.broadcast %27 : f32 to vector<1x2x128xf32>
    %29 = arith.mulf %2, %28 : vector<1x2x128xf32>
    %c1_11 = arith.constant 1 : index
    %c1_12 = arith.constant 1 : index
    %30 = memref.load %arg3[%c1_11, %c1_12] : memref<4x4xf32, #tpu.memory_space<smem>>
    %31 = vector.broadcast %30 : f32 to vector<1x2x128xf32>
    %32 = arith.mulf %4, %31 : vector<1x2x128xf32>
    %33 = arith.addf %29, %32 : vector<1x2x128xf32>
    %c1_13 = arith.constant 1 : index
    %c2_14 = arith.constant 2 : index
    %34 = memref.load %arg3[%c1_13, %c2_14] : memref<4x4xf32, #tpu.memory_space<smem>>
    %35 = vector.broadcast %34 : f32 to vector<1x2x128xf32>
    %36 = arith.mulf %6, %35 : vector<1x2x128xf32>
    %37 = arith.addf %33, %36 : vector<1x2x128xf32>
    %c1_15 = arith.constant 1 : index
    %c3_16 = arith.constant 3 : index
    %38 = memref.load %arg3[%c1_15, %c3_16] : memref<4x4xf32, #tpu.memory_space<smem>>
    %39 = vector.broadcast %38 : f32 to vector<1x2x128xf32>
    %40 = arith.mulf %8, %39 : vector<1x2x128xf32>
    %41 = arith.addf %37, %40 : vector<1x2x128xf32>
    %c1_17 = arith.constant 1 : index
    %42 = memref.load %arg4[%c1_17] : memref<4xf32, #tpu.memory_space<smem>>
    %43 = vector.broadcast %42 : f32 to vector<1x2x128xf32>
    %44 = arith.addf %41, %43 : vector<1x2x128xf32>
    %c2_18 = arith.constant 2 : index
    %c0_19 = arith.constant 0 : index
    %45 = memref.load %arg3[%c2_18, %c0_19] : memref<4x4xf32, #tpu.memory_space<smem>>
    %46 = vector.broadcast %45 : f32 to vector<1x2x128xf32>
    %47 = arith.mulf %2, %46 : vector<1x2x128xf32>
    %c2_20 = arith.constant 2 : index
    %c1_21 = arith.constant 1 : index
    %48 = memref.load %arg3[%c2_20, %c1_21] : memref<4x4xf32, #tpu.memory_space<smem>>
    %49 = vector.broadcast %48 : f32 to vector<1x2x128xf32>
    %50 = arith.mulf %4, %49 : vector<1x2x128xf32>
    %51 = arith.addf %47, %50 : vector<1x2x128xf32>
    %c2_22 = arith.constant 2 : index
    %c2_23 = arith.constant 2 : index
    %52 = memref.load %arg3[%c2_22, %c2_23] : memref<4x4xf32, #tpu.memory_space<smem>>
    %53 = vector.broadcast %52 : f32 to vector<1x2x128xf32>
    %54 = arith.mulf %6, %53 : vector<1x2x128xf32>
    %55 = arith.addf %51, %54 : vector<1x2x128xf32>
    %c2_24 = arith.constant 2 : index
    %c3_25 = arith.constant 3 : index
    %56 = memref.load %arg3[%c2_24, %c3_25] : memref<4x4xf32, #tpu.memory_space<smem>>
    %57 = vector.broadcast %56 : f32 to vector<1x2x128xf32>
    %58 = arith.mulf %8, %57 : vector<1x2x128xf32>
    %59 = arith.addf %55, %58 : vector<1x2x128xf32>
    %c2_26 = arith.constant 2 : index
    %60 = memref.load %arg4[%c2_26] : memref<4xf32, #tpu.memory_space<smem>>
    %61 = vector.broadcast %60 : f32 to vector<1x2x128xf32>
    %62 = arith.addf %59, %61 : vector<1x2x128xf32>
    %c3_27 = arith.constant 3 : index
    %c0_28 = arith.constant 0 : index
    %63 = memref.load %arg3[%c3_27, %c0_28] : memref<4x4xf32, #tpu.memory_space<smem>>
    %64 = vector.broadcast %63 : f32 to vector<1x2x128xf32>
    %65 = arith.mulf %2, %64 : vector<1x2x128xf32>
    %c3_29 = arith.constant 3 : index
    %c1_30 = arith.constant 1 : index
    %66 = memref.load %arg3[%c3_29, %c1_30] : memref<4x4xf32, #tpu.memory_space<smem>>
    %67 = vector.broadcast %66 : f32 to vector<1x2x128xf32>
    %68 = arith.mulf %4, %67 : vector<1x2x128xf32>
    %69 = arith.addf %65, %68 : vector<1x2x128xf32>
    %c3_31 = arith.constant 3 : index
    %c2_32 = arith.constant 2 : index
    %70 = memref.load %arg3[%c3_31, %c2_32] : memref<4x4xf32, #tpu.memory_space<smem>>
    %71 = vector.broadcast %70 : f32 to vector<1x2x128xf32>
    %72 = arith.mulf %6, %71 : vector<1x2x128xf32>
    %73 = arith.addf %69, %72 : vector<1x2x128xf32>
    %c3_33 = arith.constant 3 : index
    %c3_34 = arith.constant 3 : index
    %74 = memref.load %arg3[%c3_33, %c3_34] : memref<4x4xf32, #tpu.memory_space<smem>>
    %75 = vector.broadcast %74 : f32 to vector<1x2x128xf32>
    %76 = arith.mulf %8, %75 : vector<1x2x128xf32>
    %77 = arith.addf %73, %76 : vector<1x2x128xf32>
    %c3_35 = arith.constant 3 : index
    %78 = memref.load %arg4[%c3_35] : memref<4xf32, #tpu.memory_space<smem>>
    %79 = vector.broadcast %78 : f32 to vector<1x2x128xf32>
    %80 = arith.addf %77, %79 : vector<1x2x128xf32>
    %81 = vector.shape_cast %26 : vector<1x2x128xf32> to vector<1x1x2x128xf32>
    %82 = vector.shape_cast %44 : vector<1x2x128xf32> to vector<1x1x2x128xf32>
    %83 = vector.shape_cast %62 : vector<1x2x128xf32> to vector<1x1x2x128xf32>
    %84 = vector.shape_cast %80 : vector<1x2x128xf32> to vector<1x1x2x128xf32>
    %85 = tpu.concatenate %81, %82, %83, %84 in 1 : vector<1x1x2x128xf32>, vector<1x1x2x128xf32>, vector<1x1x2x128xf32>, vector<1x1x2x128xf32> -> vector<1x4x2x128xf32>
    %c0_36 = arith.constant 0 : index
    %c0_37 = arith.constant 0 : index
    %c0_38 = arith.constant 0 : index
    %c0_39 = arith.constant 0 : index
    %86 = vector.load %arg5[%c0_36, %c0_37, %c0_38, %c0_39] : memref<1x4x2x128xf32, #tpu.memory_space<vmem>>, vector<1x4x2x128xf32>
    tpu.vector_store %arg5[%c0_36, %c0_37, %c0_38, %c0_39], %85 {strides = array<i32>} : memref<1x4x2x128xf32, #tpu.memory_space<vmem>>, vector<1x4x2x128xf32>,
    %87 = arith.subf %85, %0 : vector<1x4x2x128xf32>
    %88 = math.absf %87 : vector<1x4x2x128xf32>
    %89 = vector.shape_cast %88 : vector<1x4x2x128xf32> to vector<1x1x4x2x128xf32>
    %cst = arith.constant dense<0.000000e+00> : vector<1xf32>
    %90 = vector.multi_reduction <add>, %89, %cst [1, 2, 3, 4] : vector<1x1x4x2x128xf32> to vector<1xf32>
    %91 = vector.shape_cast %90 : vector<1xf32> to vector<1x1x1x1x1xf32>
    %92 = vector.extract %91[0, 0, 0, 0, 0] : f32 from vector<1x1x1x1x1xf32>
    %93 = arith.mulf %87, %87 : vector<1x4x2x128xf32>
    %94 = vector.shape_cast %93 : vector<1x4x2x128xf32> to vector<1x1x4x2x128xf32>
    %cst_40 = arith.constant dense<0.000000e+00> : vector<1xf32>
    %95 = vector.multi_reduction <add>, %94, %cst_40 [1, 2, 3, 4] : vector<1x1x4x2x128xf32> to vector<1xf32>
    %96 = vector.shape_cast %95 : vector<1xf32> to vector<1x1x1x1x1xf32>
    %97 = vector.extract %96[0, 0, 0, 0, 0] : f32 from vector<1x1x1x1x1xf32>
    %98 = tpu.iota {dimensions = array<i32: 3>} : vector<1x1x8x128xi32>
    %c0_i32 = arith.constant 0 : i32
    %99 = vector.broadcast %c0_i32 : i32 to vector<1x1x8x128xi32>
    %100 = arith.cmpi eq, %98, %99 : vector<1x1x8x128xi32>
    %c1_i32 = arith.constant 1 : i32
    %101 = vector.broadcast %c1_i32 : i32 to vector<1x1x8x128xi32>
    %102 = arith.cmpi eq, %98, %101 : vector<1x1x8x128xi32>
    %cst_41 = arith.constant 0.000000e+00 : f32
    %103 = vector.broadcast %97 : f32 to vector<1x1x8x128xf32>
    %104 = vector.broadcast %cst_41 : f32 to vector<1x1x8x128xf32>
    %105 = arith.select %102, %103, %104 : vector<1x1x8x128xi1>, vector<1x1x8x128xf32>
    %106 = vector.broadcast %92 : f32 to vector<1x1x8x128xf32>
    %107 = arith.select %100, %106, %105 : vector<1x1x8x128xi1>, vector<1x1x8x128xf32>
    %c0_42 = arith.constant 0 : index
    %c0_43 = arith.constant 0 : index
    %c0_44 = arith.constant 0 : index
    %c0_45 = arith.constant 0 : index
    %108 = vector.load %arg6[%c0_42, %c0_43, %c0_44, %c0_45] : memref<1x1x8x128xf32, #tpu.memory_space<vmem>>, vector<1x1x8x128xf32>
    tpu.vector_store %arg6[%c0_42, %c0_43, %c0_44, %c0_45], %107 {strides = array<i32>} : memref<1x1x8x128xf32, #tpu.memory_space<vmem>>, vector<1x1x8x128xf32>,
    return
  }
  func.func @transform_0(%arg0: i32, %arg1: i32) -> (i32, i32, i32, i32) {
    %c0_i32 = arith.constant 0 : i32
    %c0_i32_0 = arith.constant 0 : i32
    %c0_i32_1 = arith.constant 0 : i32
    return %arg0, %c0_i32, %arg1, %c0_i32_0 : i32, i32, i32, i32
  }
  func.func @transform_1(%arg0: i32, %arg1: i32) -> (i32, i32) {
    %c0_i32 = arith.constant 0 : i32
    %c0_i32_0 = arith.constant 0 : i32
    %c0_i32_1 = arith.constant 0 : i32
    return %c0_i32, %c0_i32_0 : i32, i32
  }
  func.func @transform_2(%arg0: i32, %arg1: i32) -> i32 {
    %c0_i32 = arith.constant 0 : i32
    %c0_i32_0 = arith.constant 0 : i32
    return %c0_i32 : i32
  }
  func.func @transform_3(%arg0: i32, %arg1: i32) -> (i32, i32, i32, i32) {
    %c0_i32 = arith.constant 0 : i32
    %c0_i32_0 = arith.constant 0 : i32
    %c0_i32_1 = arith.constant 0 : i32
    return %arg0, %c0_i32, %arg1, %c0_i32_0 : i32, i32, i32, i32
  }
  func.func @transform_4(%arg0: i32, %arg1: i32) -> (i32, i32, i32, i32) {
    %c0_i32 = arith.constant 0 : i32
    %c0_i32_0 = arith.constant 0 : i32
    %c0_i32_1 = arith.constant 0 : i32
    return %arg0, %arg1, %c0_i32, %c0_i32_0 : i32, i32, i32, i32
  }
}

</mosaic_0001>

<bundles_post_ra>
// kernel: tpu_custom_call.1
= control target key start
LH: loop header
LB: loop body
LE: loop exit
PB: predicated region body
PF: predicated region fallthrough
CT: control target
= control target key end

     0   :  { %s1274_s0 = inlined_call_operand.hbm [shape: f32[2,4,2,128], index: 0, kind: input, shape index: {}]   ;;  %s1275_s1 = inlined_call_operand.hbm [shape: f32[4,4], index: 1, kind: input, shape index: {}]   ;;  %s1276_s2 = inlined_call_operand.vmem [shape: f32[4], index: 2, kind: input, shape index: {}]   ;;  %s1277_s3 = inlined_call_operand.hbm [shape: f32[2,4,2,128], index: 3, kind: output, shape index: {0}]   ;;  %s1278_s4 = inlined_call_operand.hbm [shape: f32[2,1,8,128], index: 4, kind: output, shape index: {1}]  }
   0x1   :  { %1283 = sst [smem:[#allocation17_spill]] %s1274_s0 }
   0x2   :  { %1284 = sst [smem:[#allocation18_spill]] %s1275_s1 }
   0x3   :  { %10 = vsyncpa [#allocation3], 0 }
   0x4   :  { %12 = vsyncpa [#allocation3 + $0x1], 0 }
   0x5   :  { %13 = vsyncpa [#allocation5], 0 }
   0x6   :  { %14 = vsyncpa [#allocation6], 0 }
   0x7   :  { %15 = vsyncpa [#allocation4], 0 }
   0x8   :  { %17 = vsyncpa [#allocation4 + $0x1], 0 }
   0x9   :  { %18 = vsyncpa [#allocation11], 0 }
   0xa   :  { %20 = vsyncpa [#allocation11 + $0x1], 0  ;;  %s935_s15 = smov 0   ;;  %s937_s16 = smov 0  }
   0xb   :  { %s939_s17 = smov 0   ;;  %s941_s18 = smov 0  }
   0xc   :  { %s943_s19 = smov 0   ;;  %s945_s20 = smov 0  }
   0xd LB: > { %s581_s21 = sadd.s32 4294967295, %s899_s20   ;;  %s582_s22 = sadd.s32 4294967294, %s899_s20   ;;  %s899_s20 = sphi %s945_s20, %s26_s20   ;;  %s895_s19 = sphi %s943_s19, %s1303_s19   ;;  %s891_s18 = sphi %s941_s18, %s1302_s18   ;;  %s887_s17 = sphi %s939_s17, %s1301_s17   ;;  %s883_s16 = sphi %s937_s16, %s1300_s16   ;;  %s879_s15 = sphi %s935_s15, %s1299_s15  }
   0xe   : > { %s47_s23 = sadd.s32 1, %s887_s17  ;;  %p54_p0 = scmp.ne.s32.totalorder %s887_s17, %s883_s16 }
   0xf   : > { %p55_p1 = scmp.eq.s32.totalorder %s899_s20, 0  ;;  %p60_p2 = scmp.ne.s32.totalorder %s883_s16, %s879_s15 }
  0x10   : > { %p973_p3 = scmp.eq.s32.totalorder %s581_s21, 0  ;;  %p128_p4 = scmp.eq.s32.totalorder %s581_s21, 1 }
  0x11   : > { %p56_p5 = por %p55_p1, %p54_p0  ;;  %p134_p6 = scmp.eq.s32.totalorder %s582_s22, 1 }
  0x12   : > { %s1285_s24 = scalar_select %p973_p3, 1, 0 }
  0x13   : > { %p979_p7 = por %p973_p3, %p60_p2  ;;  %p983_p8 = por %p128_p4, %p54_p0 }
  0x14   : > { %p987_p9 = por %p134_p6, %p60_p2  ;;  %p583_p10 = scmp.ge.s32.totalorder %s899_s20, 1 }
  0x15   : > { %s1286_s25 = scalar_select %p979_p7, 1, 0 }
  0x16   : > { %s1287_s26 = scalar_select %p983_p8, 1, 0 }
  0x17   : > { %s1288_s27 = scalar_select %p987_p9, 1, 0 }
  0x18   : > { %p169_p11 = scmp.lt.s32.totalorder %s899_s20, 3  ;;  %p661_p1 = scmp.lt.s32.totalorder %s899_s20, 2 }
  0x19   : > { %s191_s5 = sshll.u32 %s1276_s2, 4  ;;  %s202_s8 = sand.u32 1, %s887_s17   ;;  %s192_s5 = int_to_ptr.vmem [resolvable:$true] %s191_s5 }
  0x1a   : > { %p994_p13 = pnand %p583_p10, %p169_p11  ;;  %p1004_p4 = pnand %p661_p1, %p56_p5 }
  0x1b   : > { %s38_s9 = sadd.s32 1, %s895_s19  ;;  %s1292_s1 = sld [smem:[#allocation18_spill]] }
  0x1c   : > { %p641_p0 = pneg %p994_p13 }
  0x1e   : > { %p1010_p2 = pnand %p641_p0, %p973_p3 }
  0x20   : > { %p721_p6 = pneg %p1010_p2 }
  0x21   : > { %s719_s12 = scalar_lea.hbm %s1292_s1, 64 }
  0x22   : > { %p720_p5 = scmp.ne.s32.totalorder %s1292_s1, %s719_s12  ;;  %p726_p1 = scmp.lt.u32.totalorder %s719_s12, %s1292_s1 }
  0x24   : > { %p722_p10 = pnand %p721_p6, %p720_p5 }
  0x26   : > { %p723_p11 = pneg %p722_p10 }
  0x28   : > { %p728_p0 = pnand %p726_p1, %p723_p11 }
  0x2a   : > { %731 = shalt.err (!%p728_p0)
}
  0x2b   : > { %s901_s29 = smov [#allocation7]   ;;  %s732_s11 = scalar_lea.vmem %s192_s5, 16 }
  0x2c   : > { %644 = dma.hbm_to_smem (!%p1010_p2), %s1292_s1, 64, %s901_s29, [#allocation5]  }
  0x2d   : > { %p733_p12 = scmp.ne.s32.totalorder %s192_s5, %s732_s11  ;;  %p740_p3 = scmp.lt.s32.totalorder %s192_s5, %s192_s5 }
  0x2e   : > { %p741_p5 = scmp.lt.s32.totalorder %s732_s11, %s732_s11 }
  0x2f   : > { %p735_p9 = pnand %p733_p12, %p721_p6 }
  0x30   : > { %p742_p10 = por %p741_p5, %p740_p3 }
  0x31   : > { %p736_p8 = pneg %p735_p9 }
  0x33   : > { %p743_p7 = pnand %p742_p10, %p736_p8 }
  0x35   : > { %746 = shalt.err (!%p743_p7)
}
  0x36   : > { %s902_s13 = smov [#allocation8]   ;;  %p40_p11 = scmp.ge.s32.totalorder %s38_s9, 2 }
  0x37   : > { %647 = dma.vmem_to_smem (!%p1010_p2), %s192_s5, 16, %s902_s13, [#allocation6]  }
  0x38   : > { %s587_s12 = sshll.u32 %s202_s8, 3  ;;  %s621_s14 = sshll.u32 %s895_s19, 7 }
  0x39   : > { %s1305_s9 = smov (%p40_p11, %s38_s9), 0  ;;  %s1293_s0 = sld [smem:[#allocation17_spill]] }
  0x3a   : > { %s42_s29 = ssub.s32 %s895_s19, %s1305_s9  ;;  %s206_s30 = scalar_lea.vmem [#allocation2], %s587_s12 }
  0x3b   : > { %s214_s5 = sshll.u32 %s206_s30, 4  ;;  %p45_p3 = scmp.eq.s32.totalorder %s42_s29, 0  ;;  %s1046_s5 = int_to_ptr.vmem [resolvable:$true] %s214_s5 }
  0x3c   : > { %s1055_s11 = scalar_lea.sflag [#allocation3], %s202_s8  ;;  %p749_p8 = pneg %p1004_p4 }
  0x3d   : > { %s1051_s10 = scalar_select %p45_p3, %s887_s17, %s47_s23  }
  0x3f   : > { %s1042_s7 = scalar_lea.hbm %s1293_s0, %s621_s14  ;;  %s752_s21 = scalar_lea.hbm %s1293_s0, 256 }
  0x40   : > { %s747_s13 = scalar_lea.hbm %s1042_s7, 128  ;;  %p753_p2 = scmp.lt.u32.totalorder %s1042_s7, %s1293_s0 }
  0x41   : > { %p748_p7 = scmp.ne.s32.totalorder %s1042_s7, %s747_s13  ;;  %p754_p6 = scmp.lt.u32.totalorder %s752_s21, %s747_s13 }
  0x42   : > { %p756_p0 = scmp.lt.u32.totalorder %s747_s13, %s1042_s7 }
  0x43   : > { %p750_p9 = pnand %p749_p8, %p748_p7  ;;  %p755_p1 = por %p754_p6, %p753_p2 }
  0x45   : > { %p751_p12 = pneg %p750_p9  ;;  %p757_p5 = por %p756_p0, %p755_p1 }
  0x47   : > { %p758_p10 = pnand %p757_p5, %p751_p12 }
  0x49   : > { %761 = shalt.err (!%p758_p10)
}
  0x4a   : > { %s762_s23 = scalar_lea.vmem %s1046_s5, 128  ;;  %s903_s8 = smov [#allocation2]  }
  0x4b   : > { %p763_p11 = scmp.ne.s32.totalorder %s1046_s5, %s762_s23  ;;  %s767_s30 = sshll.u32 %s903_s8, 4  ;;  %s768_s30 = int_to_ptr.vmem [resolvable:$false] %s767_s30 }
  0x4c   : > { %s769_s14 = scalar_lea.vmem %s768_s30, 256  ;;  %p770_p9 = scmp.lt.s32.totalorder %s1046_s5, %s768_s30 }
  0x4d   : > { %p765_p3 = pnand %p763_p11, %p749_p8  ;;  %p771_p2 = scmp.lt.s32.totalorder %s769_s14, %s762_s23 }
  0x4f   : > { %p766_p7 = pneg %p765_p3  ;;  %p772_p6 = por %p771_p2, %p770_p9 }
  0x51   : > { %p773_p1 = pnand %p772_p6, %p766_p7 }
  0x53   : > { %776 = shalt.err (!%p773_p1)
}
  0x54   : > { %s904_s13 = smov 32   ;;  %s905_s12 = smov 2  }
  0x55   : > { %651 = dma.hbm_to_vmem [thread:$0]  (!%p1004_p4), %s1042_s7, 128, %s1046_s5, %s1055_s11, %s904_s13, %s904_s13, %s905_s12  }
  0x56   : > { %226 = sbr.rel (%p994_p13) target bundleno = 359 (0x167), region = 32  ;;  %s1086_s21 = sand.u32 (!%p994_p13), 1, %s883_s16  }
  0x57   : > { %s1089_s22 = sshll.u32 (!%p994_p13), %s1086_s21, 3  ;;  %s229_s29 = scalar_lea.sflag (!%p994_p13), [#allocation3], %s1086_s21 }
  0x58   : > { %s232_s23 = scalar_lea.vmem (!%p994_p13), [#allocation2], %s1089_s22  ;;  %p1294_p8 = scmp.ne.s32.totalorder (!%p994_p13), %s1286_s25, 0 }
  0x5d   : > { %858 = dma.done.wait (%p1294_p8), %s229_s29, 128  }
  0x5e   : > { %860 = vsyncadd (%p1294_p8), %s229_s29, 4294967168  ;;  %p1295_p4 = scmp.ne.s32.totalorder %s1285_s24, 0 }
  0x60   : > { %862 = dma.done.wait (%p1295_p4), [#allocation5], 64  }
  0x61   : > { %864 = vsyncadd (%p1295_p4), [#allocation5], 4294967232 }
  0x62   : > { %866 = dma.done.wait (%p1295_p4), [#allocation6], 16  }
  0x63   : > { %868 = vsyncadd (%p1295_p4), [#allocation6], 4294967280 }
  0x64   : > { %245 = sfence }
  0x65   : > { %s275_s28 = sld [smem:[#allocation7]]  ;;  %s596_s6 = sld [smem:[#allocation7 + $0x1]]  ;;  %v1105_v0 = vld [vmem:[%s232_s23] sm:$0x3]  ;;  %v1109_v1 = vld [vmem:[%s232_s23 + $0x2] sm:$0x3] }
  0x66   : > { %s597_s7 = sld [smem:[#allocation7 + $0x2]]  ;;  %s598_s5 = sld [smem:[#allocation7 + $0x3]]  ;;  %v1111_v2 = vld [vmem:[%s232_s23 + $0x4] sm:$0x3]  ;;  %v1115_v3 = vld [vmem:[%s232_s23 + $0x6] sm:$0x3] }
  0x67   : > { %s1107_s25 = sld [smem:[#allocation8]]  ;;  %s600_s8 = sld [smem:[#allocation7 + $0x81]]  ;;  %vm359_vm0 = vcmask 1041408  }
  0x68   : > { %s599_s11 = sld [smem:[#allocation7 + $0x80]]  ;;  %s601_s30 = sld [smem:[#allocation7 + $0x82]] }
  0x69   : > { %s602_s14 = sld [smem:[#allocation7 + $0x83]]  ;;  %s1113_s13 = sld [smem:[#allocation8 + $0x1]] }
  0x6a   : > { %s1117_s24 = sld [smem:[#allocation7 + $0x100]]  ;;  %s1119_s12 = sld [smem:[#allocation7 + $0x101]] }
  0x6b   : > { %v276_v4 = vstv %s275_s28  ;;  %v279_v5 = vstv %s596_s6  ;;  %s1121_s29 = sld [smem:[#allocation7 + $0x102]]  ;;  %s1123_s0 = sld [smem:[#allocation7 + $0x103]] }
  0x6c   : > { %v277_v6 = vmul.f32 %v276_v4, %v1105_v0  ;;  %v280_v7 = vmul.f32 %v279_v5, %v1109_v1  ;;  %v283_v8 = vstv %s597_s7  ;;  %v287_v9 = vstv %s598_s5  ;;  %s1127_s1 = sld [smem:[#allocation7 + $0x180]]  ;;  %s1131_s23 = sld [smem:[#allocation7 + $0x181]] }
  0x6d   : > { %v284_v10 = vmul.f32 %v283_v8, %v1111_v2  ;;  %v288_v11 = vmul.f32 %v287_v9, %v1115_v3  ;;  %s1133_s28 = sld [smem:[#allocation7 + $0x182]]  ;;  %v297_v15 = vstv %s600_s8  ;;  %s1138_s7 = sld [smem:[#allocation7 + $0x183]]  ;;  %v291_v17 = vstv %s1107_s25 }
  0x6e   : > { %v294_v12 = vstv %s599_s11  ;;  %v281_v13 = vadd.f32 %v280_v7, %v277_v6  ;;  %v301_v16 = vstv %s601_s30  ;;  %s1136_s6 = sld [smem:[#allocation8 + $0x2]]  ;;  %v298_v18 = vmul.f32 %v297_v15, %v1109_v1  ;;  %s1152_s5 = sld [smem:[#allocation8 + $0x3]] }
  0x6f   : > { %v295_v14 = vmul.f32 %v294_v12, %v1105_v0  ;;  %v302_v19 = vmul.f32 %v301_v16, %v1111_v2  ;;  %v305_v20 = vstv %s602_s14  ;;  %v309_v30 = vstv %s1113_s13  ;;  %s406_s14 = scalar_lea.sflag [#allocation4], %s1086_s21  ;;  %p1296_p12 = scmp.ne.s32.totalorder %s1287_s26, 0 }
  0x70   : > { %v285_v21 = vadd.f32 %v284_v10, %v281_v13  ;;  %v306_v22 = vmul.f32 %v305_v20, %v1115_v3  ;;  %v312_v23 = vstv %s1117_s24  ;;  %v315_v24 = vstv %s1119_s12  ;;  %s906_s24 = smov [#allocation9]  }
  0x71   : > { %v299_v25 = vadd.f32 %v298_v18, %v295_v14  ;;  %v313_v26 = vmul.f32 %v312_v23, %v1105_v0  ;;  %v316_v27 = vmul.f32 %v315_v24, %v1109_v1  ;;  %v319_v28 = vstv %s1121_s29  ;;  %s781_s12 = sshll.u32 %s906_s24, 4  ;;  %s782_s12 = int_to_ptr.vmem [resolvable:$false] %s781_s12 }
  0x72   : > { %v289_v29 = vadd.f32 %v288_v11, %v285_v21  ;;  %v320_v31 = vmul.f32 %v319_v28, %v1111_v2  ;;  %v323_v32 = vstv %s1123_s0  ;;  %v330_v36 = vstv %s1127_s1  ;;  %s1165_s0 = scalar_lea.vmem [#allocation9], %s1089_s22  ;;  %s622_s1 = sshll.u32 %s891_s18, 7 }
  0x73   : > { %v303_v33 = vadd.f32 %v302_v19, %v299_v25  ;;  %v317_v34 = vadd.f32 %v316_v27, %v313_v26  ;;  %v324_v35 = vmul.f32 %v323_v32, %v1115_v3  ;;  %v331_v38 = vmul.f32 %v330_v36, %v1105_v0  ;;  %s1190_s8 = scalar_lea.hbm %s1277_s3, %s622_s1  ;;  %s425_s30 = sshll.u32 %s1165_s0, 4  ;;  %s1193_s30 = int_to_ptr.vmem [resolvable:$true] %s425_s30 }
  0x74   : > { %v292_v37 = vadd.f32 %v291_v17, %v289_v29  ;;  %v333_v39 = vstv %s1131_s23  ;;  %v337_v40 = vstv %s1133_s28  ;;  %v327_v45 = vstv %s1136_s6  ;;  %s777_s13 = scalar_lea.vmem %s1193_s30, 128  ;;  %s783_s29 = scalar_lea.vmem %s782_s12, 256 }
  0x75   : > { %v307_v41 = vadd.f32 %v306_v22, %v303_v33  ;;  %v321_v42 = vadd.f32 %v320_v31, %v317_v34  ;;  %v334_v43 = vmul.f32 %v333_v39, %v1109_v1  ;;  %v338_v44 = vmul.f32 %v337_v40, %v1111_v2  ;;  %p778_p13 = scmp.ne.s32.totalorder %s1193_s30, %s777_s13  ;;  %p784_p10 = scmp.lt.s32.totalorder %s1193_s30, %s782_s12 }
  0x76   : > { %v341_v46 = vstv %s1138_s7  ;;  %v351_v47 = vsub.f32 %v292_v37, %v1105_v0  ;;  %347 = vst [vmem:[%s1165_s0] sm:$0x3] %v292_v37  ;;  %v345_v57 = vstv %s1152_s5  ;;  %p785_p11 = scmp.lt.s32.totalorder %s783_s29, %s777_s13 }
  0x77   : > { %v310_v48 = vadd.f32 %v309_v30, %v307_v41  ;;  %v325_v49 = vadd.f32 %v324_v35, %v321_v42  ;;  %v335_v50 = vadd.f32 %v334_v43, %v331_v38  ;;  %v342_v51 = vmul.f32 %v341_v46, %v1115_v3  ;;  %p779_p0 = pnand %p778_p13, %p1296_p12 }
  0x78   : > { %v355_v52 = vand.u32 2147483647, %v351_v47  ;;  %v376_v53 = vmul.f32 %v351_v47, %v351_v47  ;;  %p786_p3 = por %p785_p11, %p784_p10 }
  0x79   : > { %v328_v54 = vadd.f32 %v327_v45, %v325_v49  ;;  %v339_v55 = vadd.f32 %v338_v44, %v335_v50  ;;  %v352_v56 = vsub.f32 %v310_v48, %v1109_v1  ;;  %348 = vst [vmem:[%s1165_s0 + $0x2] sm:$0x3] %v310_v48  ;;  %p780_p5 = pneg %p779_p0 }
  0x7a   : > { %v360_v58 = vsel %vm359_vm0, %v355_v52, 0.0  ;;  %v380_v63 = vsel %vm359_vm0, %v376_v53, 0.0 }
  0x7b   : > { %v343_v59 = vadd.f32 %v342_v51, %v339_v55  ;;  %v353_v60 = vsub.f32 %v328_v54, %v1111_v2  ;;  %v356_v61 = vand.u32 2147483647, %v352_v56  ;;  %349 = vst [vmem:[%s1165_s0 + $0x4] sm:$0x3] %v328_v54  ;;  %v377_v62 = vmul.f32 %v352_v56, %v352_v56  ;;  %p787_p7 = pnand %p786_p3, %p780_p5 }
  0x7d   : > { %v346_v0 = vadd.f32 %v345_v57, %v343_v59  ;;  %v357_v4 = vand.u32 2147483647, %v353_v60  ;;  %v361_v5 = vsel %vm359_vm0, %v356_v61, 0.0  ;;  %v378_v6 = vmul.f32 %v353_v60, %v353_v60 }
  0x7e   : > { %v362_v7 = vadd.f32 %v361_v5, %v360_v58  ;;  %v381_v1 = vsel %vm359_vm0, %v377_v62, 0.0 }
  0x7f   : > { %v354_v8 = vsub.f32 %v346_v0, %v1115_v3  ;;  %v363_v9 = vsel %vm359_vm0, %v357_v4, 0.0  ;;  %350 = vst [vmem:[%s1165_s0 + $0x6] sm:$0x3] %v346_v0  ;;  %v382_v2 = vadd.f32 %v381_v1, %v380_v63  ;;  %v383_v10 = vsel %vm359_vm0, %v378_v6, 0.0 }
  0x80   : > { %v364_v11 = vadd.f32 %v363_v9, %v362_v7 }
  0x81   : > { %v358_v12 = vand.u32 2147483647, %v354_v8  ;;  %v379_v13 = vmul.f32 %v354_v8, %v354_v8  ;;  %v384_v14 = vadd.f32 %v383_v10, %v382_v2 }
  0x83   : > { %v365_v15 = vsel %vm359_vm0, %v358_v12, 0.0  ;;  %v385_v16 = vsel %vm359_vm0, %v379_v13, 0.0 }
  0x84   : > { %v366_v17 = vadd.f32 %v365_v15, %v364_v11  ;;  %v386_v3 = vadd.f32 %v385_v16, %v384_v14 }
  0x86   : > { %367 = vadd.xlane.f32.xlu0 %v366_v17 }
  0x8a   : > { %387 = vadd.xlane.f32.xlu0 %v386_v3 }
  0x8b   : > { %790 = shalt.err (!%p787_p7)
}
  0x8c   : > { %s791_s23 = scalar_lea.hbm %s1190_s8, 128  ;;  %s795_s7 = scalar_lea.hbm %s1277_s3, 256 }
  0x8d   : > { %p792_p9 = scmp.ne.s32.totalorder %s1190_s8, %s791_s23  ;;  %p796_p1 = scmp.lt.u32.totalorder %s1190_s8, %s1277_s3 }
  0x8e   : > { %p797_p8 = scmp.lt.u32.totalorder %s795_s7, %s791_s23  ;;  %p799_p13 = scmp.lt.u32.totalorder %s791_s23, %s1190_s8 }
  0x8f   : > { %p793_p2 = pnand %p792_p9, %p1296_p12 }
  0x90   : > { %p798_p4 = por %p797_p8, %p796_p1 }
  0x91   : > { %p794_p6 = pneg %p793_p2 }
  0x92   : > { %p800_p0 = por %p799_p13, %p798_p4 }
  0x94   : > { %p801_p5 = pnand %p800_p0, %p794_p6 }
  0x96   : > { %804 = shalt.err (!%p801_p5)
}
  0x97   : > { %s907_s25 = smov 32   ;;  %s908_s11 = smov 2   ;;  %v396_v32 = vlaneseq }
  0x98   : > { %637 = dma.vmem_to_hbm [thread:$0]  (%p1296_p12), %s1193_s30, 128, %s1190_s8, %s406_s14, %s907_s25, %s907_s25, %s908_s11  }
  0x99   : > { %v397_v33 = vand.u32 127, %v396_v32  ;;  %s270_s30 = scalar_lea.vmem [#allocation10], %s1089_s22  ;;  %s1225_s29 = scalar_lea.hbm %s1278_s4, %s622_s1 }
  0x9a   : > { %s442_s14 = sshll.u32 %s270_s30, 4  ;;  %s411_s22 = scalar_lea.sflag [#allocation11], %s1086_s21  ;;  %s1227_s14 = int_to_ptr.vmem [resolvable:$true] %s442_s14 }
  0x9b   : > { %vm399_vm1 = vcmp.eq.s32.totalorder %v397_v33, 1  ;;  %vm398_vm2 = vcmp.eq.s32.totalorder %v397_v33, 0  ;;  %s805_s23 = scalar_lea.vmem %s1227_s14, 128  ;;  %s909_s28 = smov [#allocation10]  }
  0x9c   : > { %p806_p10 = scmp.ne.s32.totalorder %s1227_s14, %s805_s23  ;;  %s809_s18 = sshll.u32 %s909_s28, 4  ;;  %s810_s18 = int_to_ptr.vmem [resolvable:$false] %s809_s18 }
  0x9d   : > { %s811_s6 = scalar_lea.vmem %s810_s18, 256  ;;  %p812_p7 = scmp.lt.s32.totalorder %s1227_s14, %s810_s18 }
  0x9e   : > { %p807_p11 = pnand %p806_p10, %p1296_p12  ;;  %p813_p9 = scmp.lt.s32.totalorder %s811_s6, %s805_s23 }
  0xa0   : > { %p808_p3 = pneg %p807_p11  ;;  %p814_p2 = por %p813_p9, %p812_p7 }
  0xa2   : > { %p815_p6 = pnand %p814_p2, %p808_p3 }
 0x113   : > { %v368_v18 = vpop.xlane.xlu0 %367 }
 0x114   : > { %v369_v19 = vrot.slane %v368_v18, 4 }
 0x116   : > { %v370_v20 = vadd.f32 %v369_v19, %v368_v18 }
 0x117   : > { %v388_v21 = vpop.xlane.xlu0 %387 }
 0x118   : > { %v371_v22 = vrot.slane %v370_v20, 2  ;;  %v389_v23 = vrot.slane %v388_v21, 4 }
 0x11a   : > { %v390_v24 = vadd.f32 %v389_v23, %v388_v21  ;;  %v372_v25 = vadd.f32 %v371_v22, %v370_v20 }
 0x11c   : > { %v391_v26 = vrot.slane %v390_v24, 2  ;;  %v373_v27 = vrot.slane %v372_v25, 1 }
 0x11e   : > { %v392_v28 = vadd.f32 %v391_v26, %v390_v24  ;;  %v374_v29 = vadd.f32 %v373_v27, %v372_v25 }
 0x120   : > { %623 = vpush %v374_v29  ;;  %v393_v30 = vrot.slane %v392_v28, 1 }
 0x122   : > { %v394_v31 = vadd.f32 %v393_v30, %v392_v28 }
 0x124   : > { %625 = vpush %v394_v31 }
 0x151   : > { %s624_s8 = spop %623 }
 0x152   : > { %v402_v35 = vstv %s624_s8 }
 0x155   : > { %s626_s13 = spop %625 }
 0x156   : > { %v400_v34 = vstv %s626_s13 }
 0x157   : > { %v401_v36 = vsel %vm399_vm1, %v400_v34, 0.0 }
 0x158   : > { %v403_v37 = vsel %vm398_vm2, %v402_v35, %v401_v36 }
 0x159   : > { %404 = vst [vmem:[%s270_s30] sm:$0xff] %v403_v37 }
 0x15a   : > { %818 = shalt.err (!%p815_p6)
}
 0x15b   : > { %s819_s21 = scalar_lea.hbm %s1225_s29, 128  ;;  %s823_s5 = scalar_lea.hbm %s1278_s4, 256 }
 0x15c   : > { %p820_p1 = scmp.ne.s32.totalorder %s1225_s29, %s819_s21  ;;  %p824_p13 = scmp.lt.u32.totalorder %s1225_s29, %s1278_s4 }
 0x15d   : > { %p825_p0 = scmp.lt.u32.totalorder %s823_s5, %s819_s21  ;;  %p827_p10 = scmp.lt.u32.totalorder %s819_s21, %s1225_s29 }
 0x15e   : > { %p821_p8 = pnand %p820_p1, %p1296_p12 }
 0x15f   : > { %p826_p5 = por %p825_p0, %p824_p13 }
 0x160   : > { %p822_p4 = pneg %p821_p8 }
 0x161   : > { %p828_p11 = por %p827_p10, %p826_p5 }
 0x163   : > { %p829_p3 = pnand %p828_p11, %p822_p4 }
 0x165   : > { %832 = shalt.err (!%p829_p3)
}
 0x166   : > { %638 = dma.vmem_to_hbm [thread:$0]  (%p1296_p12), %s1227_s14, 128, %s1225_s29, %s411_s22  }
 0x167 PF: > { %s454_s11 = sand.u32 1, %s879_s15   ;;  %p1297_p7 = scmp.ne.s32.totalorder %s1288_s27, 0 }
 0x168   : > { %p1298_p9 = scmp.ge.s32.totalorder %s899_s20, 2  ;;  %s455_s8 = scalar_lea.sflag [#allocation4], %s454_s11 }
 0x16a   : > { %p653_p2 = pnand %p1298_p9, %p1297_p7 }
 0x16c   : > { %870 = dma.done.wait (!%p653_p2), %s455_s8, 128  }
 0x16d   : > { %872 = vsyncadd (!%p653_p2), %s455_s8, 4294967168  ;;  %s464_s30 = scalar_lea.sflag [#allocation11], %s454_s11 }
 0x16e   : > { %874 = dma.done.wait (!%p653_p2), %s464_s30, 128  }
 0x16f   : > { %876 = vsyncadd (!%p653_p2), %s464_s30, 4294967168  ;;  %s26_s20 = sadd.s32 1, %s899_s20   ;;  %s1299_s15 = smov %s883_s16 }
 0x170   : > { %p23_p6 = scmp.ge.s32.totalorder %s26_s20, 4   ;;  %s1300_s16 = smov %s887_s17 }
 0x171   : > { %s1301_s17 = smov %s1051_s10  ;;  %s1302_s18 = smov %s895_s19 }
 0x172   : > { %s1303_s19 = smov %s1305_s9  ;;  %25 = sbr.rel (!%p23_p6) target bundleno = 13 (0xd), region = 104 }
 0x179   :  { %469 = vsyncpa [#allocation3], 1 }
 0x17a   :  { %471 = vsyncpa [#allocation3 + $0x1], 1 }
 0x17b   :  { %472 = vsyncpa [#allocation4], 1 }
 0x17c   :  { %474 = vsyncpa [#allocation4 + $0x1], 1 }
 0x17d   :  { %475 = vsyncpa [#allocation11], 1 }
 0x17e   :  { %477 = vsyncpa [#allocation11 + $0x1], 1 }
 0x17f   :  { %478 = vsyncpa [#allocation5], 1 }
 0x180   :  { %480 = vsyncpa [#allocation5 + $0x1], 1 }
 0x181   :  { %481 = vsyncpa [#allocation6], 1 }
 0x182   :  { %483 = vsyncpa [#allocation6 + $0x1], 1 }

</bundles_post_ra>
